<compile_context>
chip_gen: v5e
topology: v5e:2x2
jax: 0.10.0
libtpu: 0.0.40
codegen_flags: <defaults>
</compile_context>

<pallas_src>
import functools

import jax
import jax.numpy as jnp
from jax.experimental import pallas as pl
from jax.experimental.pallas import tpu as pltpu

IN_F, HID_F, OUT_F = 4, 16, 3

_MAX_TB = 64 * 1024   # max lanes per grid step (~24 MiB of VMEM incl. buffers)
_MIN_TB = 4 * 1024    # never shrink tiles below this just to add grid steps


def _round_up(n, m):
    return ((n + m - 1) // m) * m


def irisnet_kernel(xT_ref, w1_ref, b1_ref, w2_ref, b2_ref, oT_ref):
    xT = xT_ref[...]                                   # (4, tb)  batch on lanes

    # fc1 on the MXU: (16, 4) @ (4, tb) -> (16, tb), full f32 accumulation.
    h = jnp.dot(w1_ref[...], xT,
                preferred_element_type=jnp.float32,
                precision=jax.lax.Precision.HIGHEST)
    h = jnp.maximum(h + b1_ref[...], 0.0)              # bias + ReLU on the VPU

    # fc2 on the MXU: (3, 16) @ (16, tb) -> (3, tb).
    o = jnp.dot(w2_ref[...], h,
                preferred_element_type=jnp.float32,
                precision=jax.lax.Precision.HIGHEST)
    oT_ref[...] = (o + b2_ref[...]).astype(oT_ref.dtype)


def _choose_tile(B):
    """Lane-aligned batch tile: as big as VMEM allows, but >= ~4 grid steps
    for large batches so v7x's two TensorCores both get work."""
    Bp128 = _round_up(B, 128)
    quarter = _round_up((Bp128 + 3) // 4, 128)
    tb = max(_MIN_TB, min(_MAX_TB, Bp128, quarter))
    return min(tb, Bp128)


def _forward_t(xT, w1, b1, w2, b2, tb):
    B = xT.shape[1]
    if tb is None:
        tb = _choose_tile(B)
    else:
        tb = max(128, _round_up(int(tb), 128))   # lane-align caller-supplied tb
    Bp = _round_up(B, tb)

    xT = xT.astype(jnp.float32)
    if Bp != B:
        xT = jnp.pad(xT, ((0, 0), (0, Bp - B)))
    w1f = w1.astype(jnp.float32)
    w2f = w2.astype(jnp.float32)
    b1c = b1.reshape(HID_F, 1).astype(jnp.float32)
    b2c = b2.reshape(OUT_F, 1).astype(jnp.float32)

    # Per-step VMEM: double-buffered (8-pad, tb) in + out blocks, (16, tb) h
    # intermediate + dot temporaries.  Clamp to [32, 48] MiB (v7x has 64 MiB).
    vmem_est = 4 * tb * (2 * 8 + 2 * 8 + 2 * HID_F)
    vmem_limit = int(min(48 * 1024 * 1024, max(32 * 1024 * 1024, 2 * vmem_est)))

    flops = 2 * Bp * (IN_F * HID_F + HID_F * OUT_F) + Bp * HID_F
    bytes_accessed = 4 * (Bp * (IN_F + OUT_F)
                          + HID_F * IN_F + HID_F + OUT_F * HID_F + OUT_F)

    outT = pl.pallas_call(
        irisnet_kernel,
        out_shape=jax.ShapeDtypeStruct((OUT_F, Bp), jnp.float32),
        grid_spec=pltpu.PrefetchScalarGridSpec(
            num_scalar_prefetch=0,
            grid=(Bp // tb,),
            in_specs=[
                pl.BlockSpec((IN_F, tb), lambda i: (0, i)),      # streamed x^T
                pl.BlockSpec((HID_F, IN_F), lambda i: (0, 0)),   # resident params
                pl.BlockSpec((HID_F, 1), lambda i: (0, 0)),
                pl.BlockSpec((OUT_F, HID_F), lambda i: (0, 0)),
                pl.BlockSpec((OUT_F, 1), lambda i: (0, 0)),
            ],
            out_specs=pl.BlockSpec((OUT_F, tb), lambda i: (0, i)),
        ),
        compiler_params=pltpu.CompilerParams(
            dimension_semantics=("parallel",),   # shards batch across v7x's 2 TCs
            vmem_limit_bytes=vmem_limit,
        ),
        cost_estimate=pl.CostEstimate(
            flops=flops, transcendentals=0, bytes_accessed=bytes_accessed),
    )(xT, w1f, b1c, w2f, b2c)

    if Bp != B:
        outT = outT[:, :B]
    return outT


@functools.partial(jax.jit, static_argnames=("tb",))
def irisnet_forward_t(xT, w1, b1, w2, b2, *, tb=None):
    """Feature-major fast path: xT (4, B) -> (3, B). No host-side transposes."""
    return _forward_t(xT, w1, b1, w2, b2, tb)


@functools.partial(jax.jit, static_argnames=("tb",))
def irisnet_forward(x, w1, b1, w2, b2, *, tb=None):
    """PyTorch-layout compatibility wrapper: x (B, 4) -> (B, 3).

    Adds one transpose on each side; prefer irisnet_forward_t when the caller
    can provide/consume feature-major data (memory-bound kernel)."""
    return _forward_t(x.T, w1, b1, w2, b2, tb).T


def init_params(key):
    # PyTorch nn.Linear layouts: fc1.weight (16,4), fc1.bias (16,),
    #                            fc2.weight (3,16), fc2.bias (3,).
    k1, k2, k3, k4 = jax.random.split(key, 4)
    w1 = jax.random.normal(k1, (HID_F, IN_F), jnp.float32) * 0.5
    b1 = jax.random.normal(k2, (HID_F,), jnp.float32) * 0.1
    w2 = jax.random.normal(k3, (OUT_F, HID_F), jnp.float32) * 0.5
    b2 = jax.random.normal(k4, (OUT_F,), jnp.float32) * 0.1
    return w1, b1, w2, b2


if __name__ == "__main__":
    key = jax.random.PRNGKey(0)
    kx1, kx2, kp = jax.random.split(key, 3)
    w1, b1, w2, b2 = init_params(kp)

    def ref_forward(x):
        # Explicit HIGHEST precision so the f32 reference matches the kernel's
        # f32 MXU accumulation (default TPU matmul precision is bf16).
        h = jnp.maximum(
            jnp.dot(x, w1.T, precision=jax.lax.Precision.HIGHEST) + b1, 0.0)
        return jnp.dot(h, w2.T, precision=jax.lax.Precision.HIGHEST) + b2

    # 1) PyTorch-layout path, tiny batch (single tile after lane padding).
    x_small = jax.random.normal(kx1, (8, IN_F), jnp.float32)
    out_small = jax.block_until_ready(irisnet_forward(x_small, w1, b1, w2, b2))
    assert out_small.shape == (8, OUT_F)
    assert jnp.allclose(out_small, ref_forward(x_small), atol=1e-4, rtol=1e-4)

    # 2) Feature-major fast path: multi-step grid + tail padding (B=300, tb=128).
    x_big = jax.random.normal(kx2, (300, IN_F), jnp.float32)
    outT = jax.block_until_ready(
        irisnet_forward_t(x_big.T, w1, b1, w2, b2, tb=128))
    assert outT.shape == (OUT_F, 300)
    assert jnp.allclose(outT.T, ref_forward(x_big), atol=1e-4, rtol=1e-4)

    # 3) Automatic tile selection.
    x_mid = jax.random.normal(kx2, (384, IN_F), jnp.float32)
    out_mid = jax.block_until_ready(irisnet_forward(x_mid, w1, b1, w2, b2))
    assert out_mid.shape == (384, OUT_F)
    assert jnp.allclose(out_mid, ref_forward(x_mid), atol=1e-4, rtol=1e-4)

    print("KERNEL_OK")
</pallas_src>

<mosaic_0001>
module attributes {stable_mosaic.version = 11 : i64} {
  func.func @irisnet_kernel(%arg0: i32, %arg1: memref<4x128xf32, #tpu.memory_space<vmem>>, %arg2: memref<16x4xf32, #tpu.memory_space<vmem>>, %arg3: memref<16x1xf32, #tpu.memory_space<vmem>>, %arg4: memref<3x16xf32, #tpu.memory_space<vmem>>, %arg5: memref<3x1xf32, #tpu.memory_space<vmem>>, %arg6: memref<3x128xf32, #tpu.memory_space<vmem>>) attributes {dimension_semantics = [#tpu.dimension_semantics<parallel>], iteration_bounds = array<i64: 1>, scalar_prefetch = 0 : i64, scratch_operands = 0 : i64, tpu.core_type = #tpu.core_type<tc>, window_params = [{transform_indices = @transform_0, window_bounds = array<i64: 4, 128>}, {pipeline_mode = #tpu.pipeline_mode<synchronous>, transform_indices = @transform_1, window_bounds = array<i64: 16, 4>}, {pipeline_mode = #tpu.pipeline_mode<synchronous>, transform_indices = @transform_2, window_bounds = array<i64: 16, 1>}, {pipeline_mode = #tpu.pipeline_mode<synchronous>, transform_indices = @transform_3, window_bounds = array<i64: 3, 16>}, {pipeline_mode = #tpu.pipeline_mode<synchronous>, transform_indices = @transform_4, window_bounds = array<i64: 3, 1>}, {transform_indices = @transform_5, window_bounds = array<i64: 3, 128>}]} {
    %c0 = arith.constant 0 : index
    %c0_0 = arith.constant 0 : index
    %0 = vector.load %arg1[%c0, %c0_0] : memref<4x128xf32, #tpu.memory_space<vmem>>, vector<4x128xf32>
    %c0_1 = arith.constant 0 : index
    %c0_2 = arith.constant 0 : index
    %1 = vector.load %arg2[%c0_1, %c0_2] : memref<16x4xf32, #tpu.memory_space<vmem>>, vector<16x4xf32>
    %cst = arith.constant dense<0.000000e+00> : vector<16x128xf32>
    %2 = tpu.matmul %1, %0, %cst {dimension_numbers = #tpu.dot_dimension_numbers<[1], [0], [0], [1], [0, 0, 1, 1], [], []>, precision = #tpu.contract_precision<fp32>} : vector<16x4xf32>, vector<4x128xf32>, vector<16x128xf32> -> vector<16x128xf32>
    %c0_3 = arith.constant 0 : index
    %c0_4 = arith.constant 0 : index
    %3 = vector.load %arg3[%c0_3, %c0_4] : memref<16x1xf32, #tpu.memory_space<vmem>>, vector<16x1xf32>
    %4 = vector.broadcast %3 : vector<16x1xf32> to vector<16x128xf32>
    %5 = arith.addf %2, %4 : vector<16x128xf32>
    %cst_5 = arith.constant 0.000000e+00 : f32
    %6 = vector.broadcast %cst_5 : f32 to vector<16x128xf32>
    %7 = arith.maximumf %5, %6 : vector<16x128xf32>
    %c0_6 = arith.constant 0 : index
    %c0_7 = arith.constant 0 : index
    %8 = vector.load %arg4[%c0_6, %c0_7] : memref<3x16xf32, #tpu.memory_space<vmem>>, vector<3x16xf32>
    %cst_8 = arith.constant dense<0.000000e+00> : vector<3x128xf32>
    %9 = tpu.matmul %8, %7, %cst_8 {dimension_numbers = #tpu.dot_dimension_numbers<[1], [0], [0], [1], [0, 0, 1, 1], [], []>, precision = #tpu.contract_precision<fp32>} : vector<3x16xf32>, vector<16x128xf32>, vector<3x128xf32> -> vector<3x128xf32>
    %c0_9 = arith.constant 0 : index
    %c0_10 = arith.constant 0 : index
    %10 = vector.load %arg5[%c0_9, %c0_10] : memref<3x1xf32, #tpu.memory_space<vmem>>, vector<3x1xf32>
    %11 = vector.broadcast %10 : vector<3x1xf32> to vector<3x128xf32>
    %12 = arith.addf %9, %11 : vector<3x128xf32>
    %c0_11 = arith.constant 0 : index
    %c0_12 = arith.constant 0 : index
    %13 = vector.load %arg6[%c0_11, %c0_12] : memref<3x128xf32, #tpu.memory_space<vmem>>, vector<3x128xf32>
    tpu.vector_store %arg6[%c0_11, %c0_12], %12 {strides = array<i32>} : memref<3x128xf32, #tpu.memory_space<vmem>>, vector<3x128xf32>,
    return
  }
  func.func @transform_0(%arg0: i32) -> (i32, i32) {
    %c0_i32 = arith.constant 0 : i32
    %c0_i32_0 = arith.constant 0 : i32
    return %c0_i32, %arg0 : i32, i32
  }
  func.func @transform_1(%arg0: i32) -> (i32, i32) {
    %c0_i32 = arith.constant 0 : i32
    %c0_i32_0 = arith.constant 0 : i32
    %c0_i32_1 = arith.constant 0 : i32
    return %c0_i32, %c0_i32_0 : i32, i32
  }
  func.func @transform_2(%arg0: i32) -> (i32, i32) {
    %c0_i32 = arith.constant 0 : i32
    %c0_i32_0 = arith.constant 0 : i32
    %c0_i32_1 = arith.constant 0 : i32
    return %c0_i32, %c0_i32_0 : i32, i32
  }
  func.func @transform_3(%arg0: i32) -> (i32, i32) {
    %c0_i32 = arith.constant 0 : i32
    %c0_i32_0 = arith.constant 0 : i32
    %c0_i32_1 = arith.constant 0 : i32
    return %c0_i32, %c0_i32_0 : i32, i32
  }
  func.func @transform_4(%arg0: i32) -> (i32, i32) {
    %c0_i32 = arith.constant 0 : i32
    %c0_i32_0 = arith.constant 0 : i32
    %c0_i32_1 = arith.constant 0 : i32
    return %c0_i32, %c0_i32_0 : i32, i32
  }
  func.func @transform_5(%arg0: i32) -> (i32, i32) {
    %c0_i32 = arith.constant 0 : i32
    %c0_i32_0 = arith.constant 0 : i32
    return %c0_i32, %arg0 : i32, i32
  }
}

</mosaic_0001>

<bundles_post_ra>
// kernel: irisnet_forward.1
= control target key start
LH: loop header
LB: loop body
LE: loop exit
PB: predicated region body
PF: predicated region fallthrough
CT: control target
= control target key end

     0   :  { %vm42_vm0 = vcmask 1043456   ;;  %vm35_vm1 = vcmask 31744   ;;  %v403_v2 = vmov 0   ;;  %vm232_vm2 = vcmask 130048   ;;  %s458_s0 = inlined_call_operand.vmem [shape: f32[4,128], index: 0, kind: input, shape index: {}]   ;;  %s459_s1 = inlined_call_operand.vmem [shape: f32[16,4], index: 1, kind: input, shape index: {}]   ;;  %s460_s2 = inlined_call_operand.vmem [shape: f32[16,1], index: 2, kind: input, shape index: {}]   ;;  %s461_s3 = inlined_call_operand.vmem [shape: f32[3,16], index: 3, kind: input, shape index: {}]   ;;  %s462_s4 = inlined_call_operand.vmem [shape: f32[3,1], index: 4, kind: input, shape index: {}]   ;;  %s463_s5 = inlined_call_operand.vmem [shape: f32[3,128], index: 5, kind: output, shape index: {}]  }
   0x1   :  { %v20_v0 = vld [vmem:[%s458_s0] sm:$0xf]  ;;  %401 = vset.pattern.permute.xlu0 %v403_v2  ;;  %v24_v3 = vld [vmem:[%s460_s2 + $0x8] sm:$0xff]  ;;  %402 = vset.pattern.permute.xlu1 %v403_v2 }
   0x2   :  { %v21_v1 = vld [vmem:[%s459_s1] sm:$0xff]  ;;  %v44_v4 = vsel %vm42_vm0, %v20_v0, 0  ;;  %32 = vperm.xlu0 %401, %v24_v3   ;;  %v22_v6 = vld [vmem:[%s459_s1 + $0x8] sm:$0xff] }
   0x3   :  { %v37_v5 = vsel %vm35_vm1, %v21_v1, 0  ;;  %v61_v7 = vand.u32 4294901760, %v44_v4  ;;  %v40_v9 = vsel %vm35_vm1, %v22_v6, 0  ;;  %v23_v16 = vld [vmem:[%s460_s2] sm:$0xff] }
   0x4   :  { %v63_v8 = vand.u32 4294901760, %v37_v5  ;;  %v71_v10 = vand.u32 4294901760, %v40_v9  ;;  %v225_v36 = vld [vmem:[%s461_s3] sm:$0x7] }
   0x5   :  { %v96_v11 = vsub.f32 %v44_v4, %v61_v7  ;;  %62 = vmatpush.msra.mxu0 %v61_v7  ;;  %155 = vmatpush.msra.mxu3 %v61_v7  ;;  %v234_v37 = vsel %vm232_vm2, %v225_v36, 0  ;;  %v226_v50 = vld [vmem:[%s462_s4] sm:$0x7] }
   0x6   :  { %v64_v12 = vsub.f32 %v37_v5, %v63_v8  ;;  %v72_v13 = vsub.f32 %v40_v9, %v71_v10  ;;  %v254_v44 = vand.u32 4294901760, %v234_v37  ;;  %229 = vperm.xlu1 %402, %v226_v50  }
   0x7   :  { %127 = vmatpush.msra.mxu2 %v96_v11  ;;  %v97_v15 = vand.u32 4294901760, %v96_v11 }
   0x8   :  { %v65_v14 = vand.u32 4294901760, %v64_v12  ;;  %130 = vmatmul.f32.vlgmr.msra.gmra.mxu2 %v64_v12  ;;  %v73_v19 = vand.u32 4294901760, %v72_v13  ;;  %v255_v49 = vsub.f32 %v234_v37, %v254_v44 }
   0x9   :  { %v98_v18 = vsub.f32 %v96_v11, %v97_v15  ;;  %187 = vmatpush.msrb.mxu0 %v97_v15 }
   0xa   :  { %v66_v17 = vsub.f32 %v64_v12, %v65_v14  ;;  %159 = vmatmul.f32.vlgmr.msra.gmra.mxu3 %v65_v14  ;;  %27 = vperm.xlu0 %401, %v23_v16   ;;  %v74_v22 = vsub.f32 %v72_v13, %v73_v19  ;;  %v256_v56 = vand.u32 4294901760, %v255_v49 }
   0xb   :  { %v99_v21 = vand.u32 4294901760, %v98_v18 }
   0xc   :  { %v67_v20 = vand.u32 4294901760, %v66_v17  ;;  %v75_v23 = vand.u32 4294901760, %v74_v22  ;;  %v257_v60 = vsub.f32 %v255_v49, %v256_v56 }
   0xd   :  { %100 = vmatpush.msra.mxu1 %v99_v21 }
   0xe   :  { %68 = vmatmul.f32.vlgmr.msra.gmra.mxu0 %v67_v20  ;;  %102 = vmatmul.f32.vlgmr.msra.gmra.mxu1 %v63_v8  ;;  %v258_v0 = vand.u32 4294901760, %v257_v60 }
   0xf   :  { %213 = vmatpush.msrb.mxu1 %v61_v7 }
  0x10   :  { %135 = vmatmul.f32.gmra.mxu2 %v72_v13 }
  0x12   :  { %165 = vmatmul.f32.gmra.mxu3 %v73_v19 }
  0x16   :  { %76 = vmatmul.f32.gmra.mxu0 %v75_v23  ;;  %106 = vmatmul.f32.gmra.mxu1 %v71_v10 }
  0x1e   :  { %189 = vmatmul.f32.vlgmr.msrb.gmra.mxu0 %v63_v8  ;;  %215 = vmatmul.f32.vlgmr.msrb.gmra.mxu1 %v63_v8 }
  0x26   :  { %193 = vmatmul.f32.gmra.mxu0 %v71_v10  ;;  %219 = vmatmul.f32.gmra.mxu1 %v71_v10 }
  0x74   :  { %v33_v24 = vpop.permute.xlu0 %32 }
  0x78   :  { %v230_v7 = vpop.permute.xlu1 %229 }
  0x7c   :  { %v28_v25 = vpop.permute.xlu0 %27 }
  0x8b   :  { %v69_v26 = vpop.f32.mrf.mxu0  ;;  %v103_v27 = vpop.f32.mrf.mxu1 }
  0x8c   :  { %v70_v28 = vadd.f32 %v69_v26, %v28_v25  ;;  %v131_v29 = vpop.f32.mrf.mxu2 }
  0x8d   :  { %v160_v33 = vpop.f32.mrf.mxu3 }
  0x8e   :  { %v104_v30 = vadd.f32 %v103_v27, %v70_v28 }
  0x90   :  { %v132_v34 = vadd.f32 %v131_v29, %v104_v30 }
  0x92   :  { %v161_v38 = vadd.f32 %v160_v33, %v132_v34 }
  0x93   :  { %v77_v31 = vpop.f32.mrf.mxu0  ;;  %v107_v32 = vpop.f32.mrf.mxu1 }
  0x94   :  { %v78_v35 = vadd.f32 %v77_v31, %v33_v24  ;;  %v136_v40 = vpop.f32.mrf.mxu2 }
  0x95   :  { %v166_v47 = vpop.f32.mrf.mxu3 }
  0x96   :  { %v108_v39 = vadd.f32 %v107_v32, %v78_v35 }
  0x98   :  { %v137_v45 = vadd.f32 %v136_v40, %v108_v39 }
  0x9a   :  { %v167_v51 = vadd.f32 %v166_v47, %v137_v45 }
  0x9b   :  { %v190_v41 = vpop.f32.mrf.mxu0  ;;  %v216_v43 = vpop.f32.mrf.mxu1 }
  0x9c   :  { %v191_v42 = vadd.f32 %v190_v41, %v161_v38 }
  0x9e   :  { %v217_v46 = vadd.f32 %v216_v43, %v191_v42 }
  0xa0   :  { %v223_v48 = vmax.f32 %v217_v46, 0.0 }
  0xa2   :  { %v252_v53 = vand.u32 4294901760, %v223_v48 }
  0xa3   :  { %v194_v52 = vpop.f32.mrf.mxu0  ;;  %v220_v55 = vpop.f32.mrf.mxu1 }
  0xa4   :  { %v195_v54 = vadd.f32 %v194_v52, %v167_v51  ;;  %v284_v58 = vsub.f32 %v223_v48, %v252_v53 }
  0xa6   :  { %v221_v57 = vadd.f32 %v220_v55, %v195_v54  ;;  %v285_v63 = vand.u32 4294901760, %v284_v58 }
  0xa8   :  { %v224_v59 = vmax.f32 %v221_v57, 0.0  ;;  %v286_v3 = vsub.f32 %v284_v58, %v285_v63 }
  0xaa   :  { %v250_v61 = vand.u32 4294901760, %v224_v59  ;;  %v287_v5 = vand.u32 4294901760, %v286_v3 }
  0xac   :  { %v278_v62 = vsub.f32 %v224_v59, %v250_v61  ;;  %251 = vmatpush.msrb.mxu2 %v250_v61  ;;  %387 = vmatpush.msra.mxu1 %v250_v61 }
  0xae   :  { %253 = vmatpush.msrb.mxu2 %v252_v53  ;;  %389 = vmatpush.msra.mxu1 %v252_v53  ;;  %v279_v1 = vand.u32 4294901760, %v278_v62 }
  0xaf   :  { %391 = vmatmul.f32.vlgmr.msra.gmra.mxu1 %v254_v44  ;;  %259 = vmatmul.f32.vlgmr.msrb.gmra.mxu2 %v258_v0 }
  0xb0   :  { %310 = vmatpush.msra.mxu2 %v278_v62  ;;  %362 = vmatpush.msra.mxu0 %v279_v1  ;;  %v280_v2 = vsub.f32 %v278_v62, %v279_v1 }
  0xb2   :  { %313 = vmatpush.msra.mxu2 %v284_v58  ;;  %366 = vmatpush.msra.mxu0 %v285_v63  ;;  %v281_v4 = vand.u32 4294901760, %v280_v2 }
  0xb3   :  { %368 = vmatmul.f32.vlgmr.msra.gmra.mxu0 %v254_v44 }
  0xb4   :  { %282 = vmatpush.msrb.mxu3 %v281_v4 }
  0xb6   :  { %288 = vmatpush.msrb.mxu3 %v287_v5 }
  0xb7   :  { %290 = vmatmul.f32.vlgmr.msrb.gmra.mxu3 %v254_v44  ;;  %316 = vmatmul.f32.vlgmr.msra.gmra.mxu2 %v255_v49 }
  0xb8   :  { %335 = vmatpush.msra.mxu3 %v250_v61 }
  0xba   :  { %337 = vmatpush.msra.mxu3 %v252_v53 }
  0xbf   :  { %341 = vmatmul.f32.vlgmr.msra.gmra.mxu3 %v256_v56 }
 0x12c   :  { %v392_v16 = vpop.f32.mrf.mxu1 }
 0x130   :  { %v369_v14 = vpop.f32.mrf.mxu0 }
 0x132   :  { %v260_v6 = vpop.f32.mrf.mxu2 }
 0x133   :  { %v261_v8 = vadd.f32 %v260_v6, %v230_v7 }
 0x13a   :  { %v291_v9 = vpop.f32.mrf.mxu3  ;;  %v317_v11 = vpop.f32.mrf.mxu2 }
 0x13b   :  { %v292_v10 = vadd.f32 %v291_v9, %v261_v8 }
 0x13d   :  { %v318_v12 = vadd.f32 %v317_v11, %v292_v10 }
 0x142   :  { %v342_v13 = vpop.f32.mrf.mxu3 }
 0x143   :  { %v343_v15 = vadd.f32 %v342_v13, %v318_v12 }
 0x145   :  { %v370_v17 = vadd.f32 %v369_v14, %v343_v15 }
 0x147   :  { %v393_v18 = vadd.f32 %v392_v16, %v370_v17 }
 0x149   :  { %395 = vst [vmem:[%s463_s5] sm:$0x7] %v393_v18 }

</bundles_post_ra>
